<compile_context>
chip_gen: v7x
topology: tpu7x:2x2x1
jax: 0.10.0
libtpu: 0.0.40
codegen_flags: <defaults>
</compile_context>

<pallas_src>
import math
import functools

import jax
import jax.numpy as jnp
import numpy as np
from jax.experimental import pallas as pl
from jax.experimental.pallas import tpu as pltpu


def _round_up(x, m):
    return ((x + m - 1) // m) * m


def _tile_and_pad(total, target, align=128):
    """Pick a lane-aligned tile (multiple of `align`, <= max(target, align)) and
    the padded extent (a multiple of that tile).  Padding-to-tile instead of
    requiring divisibility lets awkward extents still use large tiles."""
    tile = max(align, (target // align) * align)
    tile = min(tile, _round_up(total, align))
    return tile, _round_up(total, tile)


# ----------------------------------------------------------------------------
# Kernel 1: KeyValue 3x3 conv as tiled (OUT, C*9) @ (C*9, HW) matmul + bias
# ----------------------------------------------------------------------------
def _conv_matmul_kernel(w_ref, p_ref, b_ref, o_ref, acc_ref):
    k = pl.program_id(2)

    @pl.when(k == 0)
    def _():
        acc_ref[...] = jnp.zeros_like(acc_ref)

    acc_ref[...] += jnp.dot(w_ref[...], p_ref[...],
                            preferred_element_type=jnp.float32)

    @pl.when(k == pl.num_programs(2) - 1)
    def _():
        o_ref[...] = acc_ref[...] + b_ref[...]


def keyvalue_conv(x, w_kv, b_kv, *, tn_target=512, tk_target=1152):
    """Fused KeyValue conv.  x: (C, H, W) f32, w_kv: (OUT, C, 3, 3), b_kv: (OUT,)
    Returns (OUT, H*W) f32 — the key/value maps flattened like KeyValue.forward."""
    C, H, W = x.shape
    OUT = w_kv.shape[0]
    HW = H * W
    K = C * 9

    # im2col glue in bf16, already in (C*9, HW) layout => no HBM transposes.
    xb = x.astype(jnp.bfloat16)
    xp = jnp.pad(xb, ((0, 0), (1, 1), (1, 1)))
    patches = jnp.stack(
        [xp[:, kh:kh + H, kw:kw + W] for kh in range(3) for kw in range(3)], axis=1
    ).reshape(K, HW)                                     # (C*9, HW)
    w_mat = w_kv.reshape(OUT, K).astype(jnp.bfloat16)    # (OUT, C*9)
    b_col = b_kv.reshape(OUT, 1).astype(jnp.float32)

    # Lane-dense tiles; extents padded up to tile multiples.
    tn, HWp = _tile_and_pad(HW, tn_target)
    tk, Kp = _tile_and_pad(K, tk_target)
    patches = jnp.pad(patches, ((0, Kp - K), (0, HWp - HW)))
    w_mat = jnp.pad(w_mat, ((0, 0), (0, Kp - K)))

    tm = OUT                                   # OUT (<=640 in real model) stays whole
    grid = (OUT // tm, HWp // tn, Kp // tk)

    out = pl.pallas_call(
        _conv_matmul_kernel,
        out_shape=jax.ShapeDtypeStruct((OUT, HWp), jnp.float32),
        grid=grid,
        in_specs=[
            pl.BlockSpec((tm, tk), lambda i, j, k: (i, k)),
            pl.BlockSpec((tk, tn), lambda i, j, k: (k, j)),
            pl.BlockSpec((tm, 1), lambda i, j, k: (i, 0)),
        ],
        out_specs=pl.BlockSpec((tm, tn), lambda i, j, k: (i, j)),
        scratch_shapes=[pltpu.VMEM((tm, tn), jnp.float32)],
        compiler_params=pltpu.CompilerParams(
            dimension_semantics=("parallel", "parallel", "arbitrary")),
        cost_estimate=pl.CostEstimate(
            flops=2 * OUT * Kp * HWp,
            transcendentals=0,
            bytes_accessed=(OUT * Kp + Kp * HWp) * 2 + OUT * HWp * 4),
    )(w_mat, patches, b_col)
    return out[:, :HW]                                    # (OUT, HW)


# ----------------------------------------------------------------------------
# Kernel 2: global Matcher — bank-tiled online softmax, per object i:
#   p   = softmax( keys_i^T @ q_in / sqrt(d_key) , over bank axis )
#   mem = values_i @ p
#   out = concat([mem, q_out], channel axis)
# ----------------------------------------------------------------------------
def _matcher_kernel(keys_ref, vals_ref, qin_ref, qout_ref, out_ref,
                    m_ref, l_ref, acc_ref, *, d_key, bank_n, tb, valdim):
    kb = pl.program_id(2)

    @pl.when(kb == 0)
    def _():
        m_ref[...] = jnp.full_like(m_ref, -jnp.inf)
        l_ref[...] = jnp.zeros_like(l_ref)
        acc_ref[...] = jnp.zeros_like(acc_ref)

    # scores for this bank tile: (tb, thw), contraction on the lane dim of keys.
    s = jnp.dot(keys_ref[...], qin_ref[...],
                preferred_element_type=jnp.float32) * (1.0 / math.sqrt(d_key))

    # Mask padded bank rows (only present when bank_n % tb != 0 — static check).
    if bank_n % tb != 0:
        row = jax.lax.broadcasted_iota(jnp.int32, (tb, 1), 0) + kb * tb
        s = jnp.where(row < bank_n, s, -jnp.inf)

    m_prev = m_ref[...]                                   # (1, thw) f32
    m_new = jnp.maximum(m_prev, jnp.max(s, axis=0, keepdims=True))
    corr = jnp.exp(m_prev - m_new)                        # f32 (EUP)
    p = jnp.exp(s - m_new)                                # (tb, thw) f32
    l_ref[...] = corr * l_ref[...] + jnp.sum(p, axis=0, keepdims=True)
    acc_ref[...] = corr * acc_ref[...] + jnp.dot(
        vals_ref[...], p.astype(jnp.bfloat16), preferred_element_type=jnp.float32)
    m_ref[...] = m_new

    @pl.when(kb == pl.num_programs(2) - 1)
    def _():
        inv_l = pl.reciprocal(l_ref[...], approx=True)    # EUP reciprocal
        out_ref[:valdim, :] = acc_ref[...] * inv_l        # mem
        out_ref[valdim:, :] = qout_ref[...]               # q_out (slice store, no concat)


def global_matcher(fb_keys, fb_values, q_in, q_out, *, tb_target=512, thw_target=512):
    """fb_keys: (obj_n, d_key, bank_n), fb_values: (obj_n, valdim, bank_n),
    q_in: (d_key, hw), q_out: (valdim, hw)  ->  (obj_n, 2*valdim, hw)   (bs = 1)."""
    obj_n, d_key, bank_n = fb_keys.shape
    valdim = fb_values.shape[1]
    hw = q_in.shape[1]

    # Bank (keys+values) is re-streamed from HBM once per hw tile => prefer the
    # largest hw tile that still fits VMEM (thw_target), padding hw up to it.
    thw, hwp = _tile_and_pad(hw, thw_target)
    tb, bank_p = _tile_and_pad(bank_n, tb_target)

    # One-time layout plumbing: keys as (obj, bank, d_key) + bf16 MXU operands.
    keys_t = jnp.transpose(fb_keys, (0, 2, 1)).astype(jnp.bfloat16)
    keys_t = jnp.pad(keys_t, ((0, 0), (0, bank_p - bank_n), (0, 0)))
    vals = jnp.pad(fb_values.astype(jnp.bfloat16),
                   ((0, 0), (0, 0), (0, bank_p - bank_n)))
    qin = jnp.pad(q_in.astype(jnp.bfloat16), ((0, 0), (0, hwp - hw)))
    qout = jnp.pad(q_out.astype(jnp.float32), ((0, 0), (0, hwp - hw)))

    kernel = functools.partial(_matcher_kernel, d_key=d_key, bank_n=bank_n,
                               tb=tb, valdim=valdim)

    out = pl.pallas_call(
        kernel,
        out_shape=jax.ShapeDtypeStruct((obj_n, 2 * valdim, hwp), jnp.float32),
        grid=(obj_n, hwp // thw, bank_p // tb),
        in_specs=[
            pl.BlockSpec((None, tb, d_key), lambda o, j, kb: (o, kb, 0)),
            pl.BlockSpec((None, valdim, tb), lambda o, j, kb: (o, 0, kb)),
            pl.BlockSpec((d_key, thw), lambda o, j, kb: (0, j)),
            pl.BlockSpec((valdim, thw), lambda o, j, kb: (0, j)),
        ],
        out_specs=pl.BlockSpec((None, 2 * valdim, thw), lambda o, j, kb: (o, 0, j)),
        scratch_shapes=[
            pltpu.VMEM((1, thw), jnp.float32),        # running max
            pltpu.VMEM((1, thw), jnp.float32),        # running denominator
            pltpu.VMEM((valdim, thw), jnp.float32),   # value accumulator
        ],
        compiler_params=pltpu.CompilerParams(
            dimension_semantics=("parallel", "parallel", "arbitrary")),
        cost_estimate=pl.CostEstimate(
            flops=2 * obj_n * hwp * bank_p * (d_key + valdim),
            transcendentals=obj_n * hwp * bank_p,
            bytes_accessed=obj_n * (hwp // thw) * bank_p * (d_key + valdim) * 2
                           + hwp * (d_key * 2 + valdim * 4)
                           + obj_n * 2 * valdim * hwp * 4),
    )(keys_t, vals, qin, qout)
    return out[:, :, :hw]


# ----------------------------------------------------------------------------
# Plain-JAX reference (semantics of KeyValue.forward + Matcher.forward, bs=1)
# ----------------------------------------------------------------------------
def reference(r4, w_kv, b_kv, fb_keys, fb_values, keydim):
    conv = jax.lax.conv_general_dilated(
        r4, w_kv, window_strides=(1, 1), padding="SAME",
        dimension_numbers=("NCHW", "OIHW", "NCHW"),
        precision=jax.lax.Precision.HIGHEST,
    ) + b_kv[None, :, None, None]                          # (1, OUT, H, W)
    OUT = w_kv.shape[0]
    kv = conv.reshape(OUT, -1)
    k4, v4 = kv[:keydim], kv[keydim:]                      # (d_key, hw), (valdim, hw)
    d_key = k4.shape[0]
    outs = []
    for i in range(fb_keys.shape[0]):
        p = (fb_keys[i].T @ k4) / math.sqrt(d_key)         # (bank_n, hw)
        p = jax.nn.softmax(p, axis=0)                      # softmax over bank axis
        mem = fb_values[i] @ p                             # (valdim, hw)
        outs.append(jnp.concatenate([mem, v4], axis=0))
    return jnp.stack(outs, axis=0)                         # (obj_n, 2*valdim, hw)


if __name__ == "__main__":
    # Scaled-down shapes (real model: C=1024, keydim=128, valdim=512, bank_n up to
    # tens of thousands).  Shapes are chosen so that HW / K / bank_n are NOT
    # multiples of the tile sizes, exercising the padding + masking + multi-step
    # reduction paths of both kernels.
    bs, C, H, W = 1, 64, 12, 12
    keydim, valdim = 16, 32
    obj_n, bank_n = 2, 400

    key = jax.random.PRNGKey(0)
    ks = jax.random.split(key, 6)
    r4 = jax.random.normal(ks[0], (bs, C, H, W), jnp.float32)
    # KeyValue params: Key conv and Value conv fused along the output-channel axis.
    fan_in = C * 9
    w_kv = jax.random.normal(ks[1], (keydim + valdim, C, 3, 3), jnp.float32) * math.sqrt(2.0 / fan_in)
    b_kv = jax.random.uniform(ks[2], (keydim + valdim,), jnp.float32, -0.05, 0.05)
    # Feature bank (keys/values per object), as built by AFB_URR.memorize.
    fb_keys = jax.random.normal(ks[3], (obj_n, keydim, bank_n), jnp.float32)
    fb_values = jax.random.normal(ks[4], (obj_n, valdim, bank_n), jnp.float32)

    # --- Pallas pipeline (small tile targets so toy shapes use multi-step grids) ---
    kv = keyvalue_conv(r4[0], w_kv, b_kv, tn_target=128, tk_target=256)   # (keydim+valdim, HW)
    k4, v4 = kv[:keydim], kv[keydim:]
    res_global = global_matcher(fb_keys, fb_values, k4, v4,
                                tb_target=128, thw_target=128)            # (obj_n, 2*valdim, HW)
    res_global = res_global.reshape(bs * obj_n, 2 * valdim, H, W)         # as in AFB_URR.segment
    res_global = jax.block_until_ready(res_global)

    # --- verify against plain-JAX f32 reference (kernels use bf16 MXU operands) ---
    ref = reference(r4, w_kv, b_kv, fb_keys, fb_values, keydim).reshape(bs * obj_n, 2 * valdim, H, W)
    assert res_global.shape == (bs * obj_n, 2 * valdim, H, W)
    assert bool(jnp.all(jnp.isfinite(res_global)))
    np.testing.assert_allclose(np.asarray(res_global), np.asarray(ref), rtol=6e-2, atol=6e-2)

    # Also exercise the default (large-tile) targets that real-model shapes would use.
    res_big = jax.block_until_ready(global_matcher(fb_keys, fb_values, k4, v4))
    np.testing.assert_allclose(np.asarray(res_big.reshape(res_global.shape)),
                               np.asarray(ref), rtol=6e-2, atol=6e-2)

    print("KERNEL_OK")
</pallas_src>

<mosaic_0001>
module attributes {stable_mosaic.version = 11 : i64} {
  func.func @_conv_matmul_kernel(%arg0: i32, %arg1: i32, %arg2: i32, %arg3: memref<48x256xbf16, #tpu.memory_space<vmem>>, %arg4: memref<256x128xbf16, #tpu.memory_space<vmem>>, %arg5: memref<48x1xf32, #tpu.memory_space<vmem>>, %arg6: memref<48x128xf32, #tpu.memory_space<vmem>>, %arg7: memref<48x128xf32, #tpu.memory_space<vmem>>) attributes {dimension_semantics = [#tpu.dimension_semantics<parallel>, #tpu.dimension_semantics<parallel>, #tpu.dimension_semantics<arbitrary>], iteration_bounds = array<i64: 1, 2, 3>, scalar_prefetch = 0 : i64, scratch_operands = 1 : i64, tpu.core_type = #tpu.core_type<tc>, window_params = [{transform_indices = @transform_0, window_bounds = array<i64: 48, 256>}, {transform_indices = @transform_1, window_bounds = array<i64: 256, 128>}, {transform_indices = @transform_2, window_bounds = array<i64: 48, 1>}, {transform_indices = @transform_3, window_bounds = array<i64: 48, 128>}]} {
    %c0_i32 = arith.constant 0 : i32
    %0 = arith.cmpi eq, %arg2, %c0_i32 : i32
    %1 = arith.extui %0 : i1 to i32
    %c0_i32_0 = arith.constant 0 : i32
    %2 = arith.cmpi ne, %1, %c0_i32_0 : i32
    scf.if %2 {
      %cst_9 = arith.constant 0.000000e+00 : f32
      %12 = vector.broadcast %cst_9 : f32 to vector<48x128xf32>
      %c0_10 = arith.constant 0 : index
      %c0_11 = arith.constant 0 : index
      %13 = vector.load %arg7[%c0_10, %c0_11] : memref<48x128xf32, #tpu.memory_space<vmem>>, vector<48x128xf32>
      tpu.vector_store %arg7[%c0_10, %c0_11], %12 {strides = array<i32>} : memref<48x128xf32, #tpu.memory_space<vmem>>, vector<48x128xf32>,
    } else {
    }
    %c0 = arith.constant 0 : index
    %c0_1 = arith.constant 0 : index
    %3 = vector.load %arg7[%c0, %c0_1] : memref<48x128xf32, #tpu.memory_space<vmem>>, vector<48x128xf32>
    %c0_2 = arith.constant 0 : index
    %c0_3 = arith.constant 0 : index
    %4 = vector.load %arg3[%c0_2, %c0_3] : memref<48x256xbf16, #tpu.memory_space<vmem>>, vector<48x256xbf16>
    %c0_4 = arith.constant 0 : index
    %c0_5 = arith.constant 0 : index
    %5 = vector.load %arg4[%c0_4, %c0_5] : memref<256x128xbf16, #tpu.memory_space<vmem>>, vector<256x128xbf16>
    %cst = arith.constant dense<0.000000e+00> : vector<48x128xf32>
    %6 = tpu.matmul %4, %5, %cst {dimension_numbers = #tpu.dot_dimension_numbers<[1], [0], [0], [1], [0, 0, 1, 1], [], []>} : vector<48x256xbf16>, vector<256x128xbf16>, vector<48x128xf32> -> vector<48x128xf32>
    %7 = arith.addf %3, %6 : vector<48x128xf32>
    %c0_6 = arith.constant 0 : index
    %c0_7 = arith.constant 0 : index
    %8 = vector.load %arg7[%c0_6, %c0_7] : memref<48x128xf32, #tpu.memory_space<vmem>>, vector<48x128xf32>
    tpu.vector_store %arg7[%c0_6, %c0_7], %7 {strides = array<i32>} : memref<48x128xf32, #tpu.memory_space<vmem>>, vector<48x128xf32>,
    %c2_i32 = arith.constant 2 : i32
    %9 = arith.cmpi eq, %arg2, %c2_i32 : i32
    %10 = arith.extui %9 : i1 to i32
    %c0_i32_8 = arith.constant 0 : i32
    %11 = arith.cmpi ne, %10, %c0_i32_8 : i32
    scf.if %11 {
      %c0_9 = arith.constant 0 : index
      %c0_10 = arith.constant 0 : index
      %12 = vector.load %arg7[%c0_9, %c0_10] : memref<48x128xf32, #tpu.memory_space<vmem>>, vector<48x128xf32>
      %c0_11 = arith.constant 0 : index
      %c0_12 = arith.constant 0 : index
      %13 = vector.load %arg5[%c0_11, %c0_12] : memref<48x1xf32, #tpu.memory_space<vmem>>, vector<48x1xf32>
      %14 = vector.broadcast %13 : vector<48x1xf32> to vector<48x128xf32>
      %15 = arith.addf %12, %14 : vector<48x128xf32>
      %c0_13 = arith.constant 0 : index
      %c0_14 = arith.constant 0 : index
      %16 = vector.load %arg6[%c0_13, %c0_14] : memref<48x128xf32, #tpu.memory_space<vmem>>, vector<48x128xf32>
      tpu.vector_store %arg6[%c0_13, %c0_14], %15 {strides = array<i32>} : memref<48x128xf32, #tpu.memory_space<vmem>>, vector<48x128xf32>,
    } else {
    }
    return
  }
  func.func @transform_0(%arg0: i32, %arg1: i32, %arg2: i32) -> (i32, i32) {
    %c0_i32 = arith.constant 0 : i32
    return %arg0, %arg2 : i32, i32
  }
  func.func @transform_1(%arg0: i32, %arg1: i32, %arg2: i32) -> (i32, i32) {
    %c0_i32 = arith.constant 0 : i32
    return %arg2, %arg1 : i32, i32
  }
  func.func @transform_2(%arg0: i32, %arg1: i32, %arg2: i32) -> (i32, i32) {
    %c0_i32 = arith.constant 0 : i32
    %c0_i32_0 = arith.constant 0 : i32
    return %arg0, %c0_i32 : i32, i32
  }
  func.func @transform_3(%arg0: i32, %arg1: i32, %arg2: i32) -> (i32, i32) {
    %c0_i32 = arith.constant 0 : i32
    return %arg0, %arg1 : i32, i32
  }
}

</mosaic_0001>

<bundles_post_ra>
// kernel: tpu_custom_call.1
= control target key start
LH: loop header
LB: loop body
LE: loop exit
PB: predicated region body
PF: predicated region fallthrough
CT: control target
= control target key end

     0   :  { %s1658_s0 = inlined_call_operand.hbm [shape: bf16[48,768], index: 0, kind: input, shape index: {}]   ;;  %s1659_s1 = inlined_call_operand.hbm [shape: bf16[768,256], index: 1, kind: input, shape index: {}]   ;;  %s1660_s2 = inlined_call_operand.vmem [shape: f32[48,1], index: 2, kind: input, shape index: {}]   ;;  %s1661_s3 = inlined_call_operand.hbm [shape: f32[48,256], index: 3, kind: output, shape index: {}]  }
   0x1   :  { %1673 = sst [smem:[#allocation16_spill]] %s1658_s0 }
   0x2   :  { %1674 = sst [smem:[#allocation17_spill]] %s1660_s2 }
   0x3   :  { %1675 = sst [smem:[#allocation18_spill]] %s1661_s3 }
   0x4   :  { %8 = vsyncpa [#allocation4], 0 }
   0x5   :  { %10 = vsyncpa [#allocation4 + $0x1], 0 }
   0x6   :  { %11 = vsyncpa [#allocation7], 0 }
   0x7   :  { %13 = vsyncpa [#allocation7 + $0x1], 0 }
   0x8   :  { %14 = vsyncpa [#allocation5], 0 }
   0x9   :  { %16 = vsyncpa [#allocation5 + $0x1], 0  ;;  %s1249_s12 = smov 0   ;;  %s1251_s13 = smov 0  }
   0xa   :  { %s1253_s14 = smov 0   ;;  %s1255_s15 = smov 0  }
   0xb   :  { %s1257_s16 = smov 0   ;;  %s1259_s17 = smov 0  }
   0xc   :  { %s1261_s18 = smov 0   ;;  %s1263_s19 = smov 0  }
   0xd   :  { %s1265_s20 = smov 0   ;;  %s1267_s21 = smov 0  }
   0xe   :  { %s1269_s22 = smov 0   ;;  %s1271_s23 = smov 0  }
   0xf   :  { %s1273_s24 = smov 0   ;;  %s1275_s25 = smov 0  }
  0x10 LB: > { %1676 = sst [smem:[#allocation12_spill]] %s1194_s20  ;;  %s741_s26 = sadd.s32 4294967295, %s1214_s25   ;;  %s1214_s25 = sphi %s1275_s25, %s22_s25   ;;  %s1210_s24 = sphi %s1273_s24, %s1720_s24   ;;  %s1206_s23 = sphi %s1271_s23, %s1719_s23   ;;  %s1202_s22 = sphi %s1269_s22, %s1718_s22   ;;  %s1198_s21 = sphi %s1267_s21, %s1717_s21   ;;  %s1194_s20 = sphi %s1265_s20, %s1706_s20   ;;  %s1190_s19 = sphi %s1263_s19, %s1716_s19   ;;  %s1186_s18 = sphi %s1261_s18, %s1715_s18   ;;  %s1182_s17 = sphi %s1259_s17, %s1714_s17   ;;  %s1178_s16 = sphi %s1257_s16, %s1713_s16   ;;  %s1174_s15 = sphi %s1255_s15, %s1712_s15   ;;  %s1170_s14 = sphi %s1253_s14, %s1711_s14   ;;  %s1166_s13 = sphi %s1251_s13, %s1710_s13   ;;  %s1162_s12 = sphi %s1249_s12, %s1709_s12  }
  0x11   : > { %1677 = sst [smem:[#allocation13_spill]] %s1202_s22  ;;  %s34_s27 = sadd.s32 1, %s1206_s23 }
  0x12   : > { %p1319_p0 = scmp.ge.s32.totalorder %s34_s27, 3  ;;  %s50_s29 = sadd.s32 1, %s1194_s20 }
  0x13   : > { %p57_p1 = scmp.ne.s32.totalorder %s1194_s20, %s1190_s19  ;;  %p1667_p2 = scmp.eq.s32.totalorder %s1214_s25, 0 }
  0x14   : > { %s1722_s27 = smov (%p1319_p0, %s34_s27), 0  ;;  %p63_p4 = scmp.ne.s32.totalorder %s1190_s19, %s1186_s18 }
  0x15   : > { %1679 = sst [smem:[#allocation14_spill]] %s1722_s27  ;;  %p59_p3 = por %p1667_p2, %p57_p1 }
  0x16   : > { %s1336_s30 = ssub.s32 %s1206_s23, %s1722_s27  ;;  %p1338_p5 = scmp.eq.s32.totalorder %s741_s26, 0 }
  0x17   : > { %p48_p6 = scmp.eq.s32.totalorder %s1336_s30, 0  ;;  %p1343_p7 = scmp.eq.s32.totalorder %s741_s26, 5 }
  0x18   : > { %s1680_s4 = scalar_select %p1338_p5, 1, 0 }
  0x19   : > { %s1681_s5 = scalar_select %p1343_p7, 1, 0 }
  0x1a   : > { %p1349_p8 = por %p1338_p5, %p63_p4  ;;  %p1666_p9 = scmp.lt.s32.totalorder %s1214_s25, 6 }
  0x1b   : > { %s1354_s7 = scalar_select %p48_p6, %s1194_s20, %s50_s29  }
  0x1c   : > { %s1682_s6 = scalar_select %p1349_p8, 1, 0 }
  0x1d   : > { %1683 = sst [smem:[#allocation15_spill]] %s1354_s7  ;;  %s178_s8 = sand.u32 1, %s1194_s20  }
  0x1e   : > { %s833_s9 = smul.u32 48, %s178_s8  ;;  %s781_s10 = sshll.u32 %s1206_s23, 7 }
  0x1f   : > { %p1361_p10 = pnand %p1666_p9, %p59_p3  ;;  %s1685_s0 = sld [smem:[#allocation16_spill]] }
  0x20   : > { %s182_s29 = scalar_lea.vmem [#allocation3], %s833_s9  ;;  %s1372_s20 = scalar_lea.sflag [#allocation4], %s178_s8 }
  0x21   : > { %s192_s7 = sshll.u32 %s182_s29, 4  ;;  %p1006_p12 = pneg %p1361_p10  ;;  %s1370_s7 = int_to_ptr.vmem [resolvable:$true] %s192_s7 }
  0x25   : > { %s1368_s27 = scalar_lea.hbm %s1685_s0, %s781_s10  ;;  %s1009_s26 = scalar_lea.hbm %s1685_s0, 2304 }
  0x26   : > { %s1004_s3 = scalar_lea.hbm %s1368_s27, 768  ;;  %p1010_p3 = scmp.lt.u32.totalorder %s1368_s27, %s1685_s0 }
  0x27   : > { %p1005_p11 = scmp.ne.s32.totalorder %s1368_s27, %s1004_s3  ;;  %p1011_p4 = scmp.lt.u32.totalorder %s1009_s26, %s1004_s3 }
  0x28   : > { %p1013_p9 = scmp.lt.u32.totalorder %s1004_s3, %s1368_s27 }
  0x29   : > { %p1007_p13 = pnand %p1006_p12, %p1005_p11  ;;  %p1012_p6 = por %p1011_p4, %p1010_p3 }
  0x2b   : > { %p1008_p1 = pneg %p1007_p13  ;;  %p1014_p2 = por %p1013_p9, %p1012_p6 }
  0x2d   : > { %p1015_p8 = pnand %p1014_p2, %p1008_p1 }
  0x2f   : > { %1018 = shalt.err (!%p1015_p8)
}
  0x30   : > { %s1019_s8 = scalar_lea.vmem %s1370_s7, 768  ;;  %s1216_s9 = smov [#allocation3]  }
  0x31   : > { %p1020_p11 = scmp.ne.s32.totalorder %s1370_s7, %s1019_s8  ;;  %s1024_s29 = sshll.u32 %s1216_s9, 4  ;;  %s1025_s29 = int_to_ptr.vmem [resolvable:$false] %s1024_s29 }
  0x32   : > { %s1026_s2 = scalar_lea.vmem %s1025_s29, 1536  ;;  %p1027_p5 = scmp.lt.s32.totalorder %s1370_s7, %s1025_s29 }
  0x33   : > { %p1022_p13 = pnand %p1020_p11, %p1006_p12  ;;  %p1028_p3 = scmp.lt.s32.totalorder %s1026_s2, %s1019_s8 }
  0x35   : > { %p1023_p7 = pneg %p1022_p13  ;;  %p1029_p4 = por %p1028_p3, %p1027_p5 }
  0x37   : > { %p1030_p9 = pnand %p1029_p4, %p1023_p7 }
  0x39   : > { %1033 = shalt.err (!%p1030_p9)
}
  0x3a   : > { %s1217_s3 = smov 384   ;;  %s1670_s22 = smov 128  }
  0x3b   : > { %s1219_s10 = smov 8   ;;  %p752_p2 = scmp.ge.s32.totalorder %s1214_s25, 1 }
  0x3c   : > { %845 = dma.hbm_to_vmem [thread:$0]  (!%p1361_p10), %s1368_s27, 768, %s1370_s7, %s1372_s20, %s1217_s3, %s1670_s22, %s1219_s10  }
  0x3d   : > { %p223_p5 = scmp.lt.s32.totalorder %s1214_s25, 7  ;;  %s742_s26 = sadd.s32 4294967294, %s1214_s25  }
  0x3e   : > { %s37_s8 = sadd.s32 1, %s1210_s24  ;;  %s78_s9 = sadd.s32 1, %s1182_s17 }
  0x3f   : > { %p1403_p7 = pnand %p752_p2, %p223_p5  ;;  %s1724_s8 = smov (!%p1319_p0, %s37_s8), %s1210_s24 }
  0x40   : > { %p85_p8 = scmp.ne.s32.totalorder %s1182_s17, %s1178_s16  ;;  %p91_p10 = scmp.ne.s32.totalorder %s1178_s16, %s1174_s15 }
  0x41   : > { %p39_p12 = scmp.ge.s32.totalorder %s1724_s8, 2  ;;  %s132_s20 = sadd.s32 1, %s1170_s14 }
  0x42   : > { %p1687_p1 = scmp.eq.s32.totalorder %s1214_s25, 0  ;;  %p1689_p11 = scmp.ne.s32.totalorder %s1680_s4, 0 }
  0x43   : > { %s1726_s8 = smov (%p39_p12, %s1724_s8), 0  ;;  %p142_p0 = scmp.ne.s32.totalorder %s1170_s14, %s1166_s13 }
  0x44   : > { %p1420_p6 = por %p85_p8, %p1687_p1  ;;  %p1426_p13 = por %p91_p10, %p1689_p11 }
  0x45   : > { %p148_p3 = scmp.ne.s32.totalorder %s1166_s13, %s1162_s12  ;;  %s74_s15 = ssub.s32 %s1210_s24, %s1726_s8 }
  0x46   : > { %s1690_s7 = scalar_select %p1426_p13, 1, 0 }
  0x47   : > { %p149_p4 = scmp.eq.s32.totalorder %s742_s26, 5  ;;  %s75_s28 = sor.u32 %s74_s15, %s1336_s30 }
  0x48   : > { %p130_p9 = scmp.eq.s32.totalorder %s74_s15, 0  ;;  %p76_p2 = scmp.eq.s32.totalorder %s75_s28, 0 }
  0x49   : > { %p1691_p5 = scmp.ne.s32.totalorder %s1681_s5, 0  ;;  %p1451_p10 = por %p149_p4, %p148_p3 }
  0x4a   : > { %s1446_s11 = scalar_select %p130_p9, %s1170_s14, %s132_s20  }
  0x4b   : > { %p1441_p8 = por %p1691_p5, %p142_p0  ;;  %s202_s3 = sand.u32 1, %s1182_s17  }
  0x4c   : > { %s1449_s29 = scalar_select %p76_p2, %s1182_s17, %s78_s9  }
  0x4d   : > { %s1692_s4 = scalar_select %p1441_p8, 1, 0 }
  0x4e   : > { %s1693_s2 = scalar_select %p1451_p10, 1, 0 }
  0x4f   : > { %s748_s10 = sshll.u32 %s202_s3, 7  ;;  %s782_s30 = sshll.u32 %s1206_s23, 6 }
  0x50   : > { %s212_s26 = sadd.s32 %s1210_s24, %s782_s30  ;;  %s206_s22 = scalar_lea.vmem [#allocation6], %s748_s10 }
  0x51   : > { %s215_s15 = sshll.u32 %s206_s22, 4  ;;  %s751_s28 = sshll.u32 %s212_s26, 6  ;;  %s1458_s15 = int_to_ptr.vmem [resolvable:$true] %s215_s15 }
  0x52   : > { %s1463_s20 = scalar_lea.hbm %s1659_s1, %s751_s28  ;;  %p1694_p12 = scmp.lt.s32.totalorder %s1214_s25, 6 }
  0x53   : > { %s1473_s22 = scalar_lea.sflag [#allocation7], %s202_s3  ;;  %s1034_s10 = scalar_lea.hbm %s1463_s20, 2048 }
  0x54   : > { %p1469_p1 = pnand %p1694_p12, %p1420_p6  ;;  %p1035_p11 = scmp.ne.s32.totalorder %s1463_s20, %s1034_s10 }
  0x55   : > { %s1039_s30 = scalar_lea.hbm %s1659_s1, 12288  ;;  %p1040_p6 = scmp.lt.u32.totalorder %s1463_s20, %s1659_s1 }
  0x56   : > { %p1036_p0 = pneg %p1469_p1  ;;  %p1041_p9 = scmp.lt.u32.totalorder %s1039_s30, %s1034_s10 }
  0x57   : > { %p1043_p5 = scmp.lt.u32.totalorder %s1034_s10, %s1463_s20 }
  0x58   : > { %p1037_p3 = pnand %p1036_p0, %p1035_p11  ;;  %p1042_p2 = por %p1041_p9, %p1040_p6 }
  0x5a   : > { %p1038_p4 = pneg %p1037_p3  ;;  %p1044_p12 = por %p1043_p5, %p1042_p2 }
  0x5c   : > { %p1045_p10 = pnand %p1044_p12, %p1038_p4 }
  0x5e   : > { %1048 = shalt.err (!%p1045_p10)
}
  0x5f   : > { %s1049_s3 = scalar_lea.vmem %s1458_s15, 2048  ;;  %s1220_s5 = smov [#allocation6]  }
  0x60   : > { %p1050_p11 = scmp.ne.s32.totalorder %s1458_s15, %s1049_s3  ;;  %s1054_s0 = sshll.u32 %s1220_s5, 4  ;;  %s1055_s0 = int_to_ptr.vmem [resolvable:$false] %s1054_s0 }
  0x61   : > { %s1056_s27 = scalar_lea.vmem %s1055_s0, 4096  ;;  %p1057_p13 = scmp.lt.s32.totalorder %s1458_s15, %s1055_s0 }
  0x62   : > { %p1052_p3 = pnand %p1050_p11, %p1036_p0  ;;  %p1058_p6 = scmp.lt.s32.totalorder %s1056_s27, %s1049_s3 }
  0x64   : > { %p1053_p8 = pneg %p1052_p3  ;;  %p1059_p9 = por %p1058_p6, %p1057_p13 }
  0x66   : > { %p1060_p2 = pnand %p1059_p9, %p1053_p8 }
  0x68   : > { %1063 = shalt.err (!%p1060_p2)
}
  0x69   : > { %s1221_s10 = smov 64   ;;  %s1222_s30 = smov 4  }
  0x6a   : > { %s1696_s26 = smov 128   ;;  %227 = sbr.rel (%p1403_p7) target bundleno = 427 (0x1ab), region = 32 }
  0x6b   : > { %848 = dma.hbm_to_vmem [thread:$0]  (!%p1469_p1), %s1463_s20, 2048, %s1458_s15, %s1473_s22, %s1696_s26, %s1221_s10, %s1222_s30  }
  0x6c   : > { %s229_s28 = sand.u32 (!%p1403_p7), 1, %s1190_s19   ;;  %p1697_p13 = scmp.ne.s32.totalorder (!%p1403_p7), %s1682_s6, 0 }
  0x6d   : > { %s834_s5 = smul.u32 (!%p1403_p7), 48, %s229_s28  ;;  %s230_s3 = scalar_lea.sflag (!%p1403_p7), [#allocation4], %s229_s28 }
  0x6f   : > { %s1505_s0 = scalar_lea.vmem (!%p1403_p7), [#allocation3], %s834_s5 }
  0x71   : > { %1149 = dma.done.wait (%p1697_p13), %s230_s3, 768  }
  0x72   : > { %1151 = vsyncadd (%p1697_p13), %s230_s3, 4294966528  ;;  %s238_s9 = sand.u32 1, %s1178_s16   ;;  %p1698_p7 = scmp.ne.s32.totalorder %s1690_s7, 0 }
  0x73   : > { %s753_s27 = sshll.u32 %s238_s9, 7  ;;  %s239_s15 = scalar_lea.sflag [#allocation7], %s238_s9 }
  0x74   : > { %s1512_s20 = scalar_lea.vmem [#allocation6], %s753_s27 }
  0x75   : > { %1153 = dma.done.wait (%p1698_p7), %s239_s15, 2048  }
  0x76   : > { %1155 = vsyncadd (%p1698_p7), %s239_s15, 4294965248  ;;  %s272_s18 = sand.u32 1, %s1166_s13   ;;  %p754_p8 = scmp.ne.s32.totalorder %s1198_s21, 0 }
  0x77   : > { %s835_s22 = smul.u32 48, %s272_s18  ;;  %v1223_v0 = vmov (!%p754_p8), 0.0  }
  0x78   : > { %289 = sbr.rel (%p754_p8) target bundleno = 127 (0x7f), region = 44  ;;  %290 = vst [vmem:[#allocation2] sm:$0xff] (!%p754_p8), %v1223_v0  ;;  %291 = vst [vmem:[#allocation2 + $0x8] sm:$0xff] (!%p754_p8), %v1223_v0 }
  0x79   : > { %s1521_s10 = scalar_lea.vmem [#allocation8], %s835_s22  ;;  %292 = vst [vmem:[#allocation2 + $0x10] sm:$0xff] (!%p754_p8), %v1223_v0  ;;  %293 = vst [vmem:[#allocation2 + $0x18] sm:$0xff] (!%p754_p8), %v1223_v0 }
  0x7a   : > { %294 = vst [vmem:[#allocation2 + $0x20] sm:$0xff] (!%p754_p8), %v1223_v0  ;;  %295 = vst [vmem:[#allocation2 + $0x28] sm:$0xff] (!%p754_p8), %v1223_v0 }
  0x7f PF: > { %v977_v1 = vld [vmem:[%s1512_s20 + $0x40] sm:$0xff]   ;;  %v979_v3 = vld [vmem:[%s1512_s20 + $0x48] sm:$0xff]   ;;  %v981_v5 = vld [vmem:[%s1512_s20 + $0x50] sm:$0xff]   ;;  %p777_p10 = scmp.ne.s32.totalorder %s1198_s21, 2 }
  0x80   : > { %v978_v2 = vld [vmem:[%s1512_s20] sm:$0xff]   ;;  %817 = vmatprep.subr.bf16.mxu1 %v977_v1  ;;  %783 = vmatprep.subr.bf16.mxu0 %v977_v1  ;;  %v980_v4 = vld [vmem:[%s1512_s20 + $0x8] sm:$0xff]   ;;  %v982_v6 = vld [vmem:[%s1512_s20 + $0x10] sm:$0xff]   ;;  %s1699_s30 = sld [smem:[#allocation17_spill]] (!%p777_p10)  ;;  %v1224_v55 = vmov (!%p777_p10), 0  }
  0x81   : > { %825 = vmatpush3.bf16.msra.mxu1 %v978_v2  ;;  %784 = vmatpush3.bf16.msra.mxu0 %v978_v2  ;;  %v983_v7 = vld [vmem:[%s1512_s20 + $0x58] sm:$0xff]   ;;  %v985_v9 = vld [vmem:[%s1512_s20 + $0x60] sm:$0xff]   ;;  %v987_v11 = vld [vmem:[%s1512_s20 + $0x68] sm:$0xff]  }
  0x82   : > { %818 = vmatprep.subr.bf16.mxu1 %v979_v3  ;;  %785 = vmatprep.subr.bf16.mxu0 %v979_v3  ;;  %v984_v8 = vld [vmem:[%s1512_s20 + $0x18] sm:$0xff]   ;;  %v986_v10 = vld [vmem:[%s1512_s20 + $0x20] sm:$0xff]   ;;  %v988_v14 = vld [vmem:[%s1512_s20 + $0x28] sm:$0xff]  }
  0x83   : > { %v995_v12 = vld [vmem:[%s1505_s0 + $0x14] ss:$8 sps:$4 sm:$0xff]   ;;  %v998_v13 = vld [vmem:[%s1505_s0 + $0x4] ss:$8 sps:$4 sm:$0xff]   ;;  %v993_v19 = vld [vmem:[%s1505_s0 + $0x10] ss:$8 sps:$4 sm:$0xff]   ;;  %1003 = vset.pattern.permute.xlu1 (!%p777_p10), %v1224_v55  ;;  %1002 = vset.pattern.permute.xlu0 (!%p777_p10), %v1224_v55 }
  0x84   : > { %v989_v15 = vld [vmem:[%s1512_s20 + $0x70] sm:$0xff]   ;;  %506 = vmatprep.mubr.bf16.mxu1 %v995_v12  ;;  %498 = vmatprep.mubr.bf16.mxu0 %v998_v13  ;;  %v991_v17 = vld [vmem:[%s1512_s20 + $0x78] sm:$0xff]   ;;  %v298_v25 = vld [vmem:[#allocation2 + $0x10] sm:$0xff] }
  0x85   : > { %826 = vmatpush3.bf16.msra.mxu1 %v980_v4  ;;  %786 = vmatpush3.bf16.msra.mxu0 %v980_v4  ;;  %v990_v16 = vld [vmem:[%s1512_s20 + $0x30] sm:$0xff]   ;;  %v992_v18 = vld [vmem:[%s1512_s20 + $0x38] sm:$0xff]   ;;  %v299_v33 = vld [vmem:[#allocation2 + $0x18] sm:$0xff] }
  0x86   : > { %819 = vmatprep.subr.bf16.mxu1 %v981_v5  ;;  %787 = vmatprep.subr.bf16.mxu0 %v981_v5  ;;  %v996_v20 = vld [vmem:[%s1505_s0] ss:$8 sps:$4 sm:$0xff]   ;;  %v999_v21 = vld [vmem:[%s1505_s0 + $0x24] ss:$8 sps:$4 sm:$0xff]  }
  0x87   : > { %v1001_v22 = vld [vmem:[%s1505_s0 + $0x20] ss:$8 sps:$4 sm:$0xff]  }
  0x88   : > { %v296_v27 = vld [vmem:[#allocation2] sm:$0xff]  ;;  %v297_v35 = vld [vmem:[#allocation2 + $0x8] sm:$0xff]  ;;  %v547_v53 = vld [vmem:[%s1699_s30 + $0x10] sm:$0xff] (!%p777_p10) }
  0x89   : > { %827 = vmatpush3.bf16.msra.mxu1 %v982_v6  ;;  %788 = vmatpush3.bf16.msra.mxu0 %v982_v6  ;;  %v300_v44 = vld [vmem:[#allocation2 + $0x20] sm:$0xff]  ;;  %v301_v48 = vld [vmem:[#allocation2 + $0x28] sm:$0xff]  ;;  %v548_v56 = vld [vmem:[%s1699_s30 + $0x18] sm:$0xff] (!%p777_p10) }
  0x8a   : > { %820 = vmatprep.subr.bf16.mxu1 %v983_v7  ;;  %789 = vmatprep.subr.bf16.mxu0 %v983_v7  ;;  %v545_v54 = vld [vmem:[%s1699_s30] sm:$0xff] (!%p777_p10)  ;;  %v546_v57 = vld [vmem:[%s1699_s30 + $0x8] sm:$0xff] (!%p777_p10) }
  0x8b   : > { %563 = vperm.xlu1 (!%p777_p10), %1003, %v547_v53   ;;  %553 = vperm.xlu0 (!%p777_p10), %1002, %v545_v54   ;;  %v550_v58 = vld [vmem:[%s1699_s30 + $0x28] sm:$0xff] (!%p777_p10)  ;;  %v549_v59 = vld [vmem:[%s1699_s30 + $0x20] sm:$0xff] (!%p777_p10) }
  0x8d   : > { %828 = vmatpush3.bf16.msra.mxu1 %v984_v8  ;;  %790 = vmatpush3.bf16.msra.mxu0 %v984_v8 }
  0x8e   : > { %821 = vmatprep.subr.bf16.mxu1 %v985_v9  ;;  %791 = vmatprep.subr.bf16.mxu0 %v985_v9 }
  0x8f   : > { %568 = vperm.xlu1 (!%p777_p10), %1003, %v548_v56   ;;  %558 = vperm.xlu0 (!%p777_p10), %1002, %v546_v57  }
  0x91   : > { %829 = vmatpush3.bf16.msra.mxu1 %v986_v10  ;;  %792 = vmatpush3.bf16.msra.mxu0 %v986_v10 }
  0x92   : > { %822 = vmatprep.subr.bf16.mxu1 %v987_v11  ;;  %793 = vmatprep.subr.bf16.mxu0 %v987_v11 }
  0x93   : > { %578 = vperm.xlu1 (!%p777_p10), %1003, %v550_v58   ;;  %573 = vperm.xlu0 (!%p777_p10), %1002, %v549_v59  }
  0x95   : > { %830 = vmatpush3.bf16.msra.mxu1 %v988_v14  ;;  %794 = vmatpush3.bf16.msra.mxu0 %v988_v14 }
  0x96   : > { %823 = vmatprep.subr.bf16.mxu1 %v989_v15  ;;  %795 = vmatprep.subr.bf16.mxu0 %v989_v15 }
  0x99   : > { %831 = vmatpush3.bf16.msra.mxu1 %v990_v16  ;;  %796 = vmatpush3.bf16.msra.mxu0 %v990_v16 }
  0x9a   : > { %824 = vmatprep.subr.bf16.mxu1 %v991_v17  ;;  %797 = vmatprep.subr.bf16.mxu0 %v991_v17 }
  0x9d   : > { %832 = vmatpush3.bf16.msra.mxu1 %v992_v18  ;;  %798 = vmatpush3.bf16.msra.mxu0 %v992_v18 }
  0xa0   : > { %507 = vmatmul.mubr.bf16.vlgmr.msra.gmra.mrb[0].mxu1 %v993_v19  ;;  %499 = vmatmul.mubr.bf16.vlgmr.msra.gmra.mrb[0].mxu0 %v996_v20 }
  0xa1   : > { %514 = vmatprep.mubr.bf16.mxu1 %v999_v21 }
  0xa8   : > { %515 = vmatmul.mubr.bf16.gmra.mrb[4].mxu1 %v1001_v22 }
 0x10a   : > { %v564_v62 = vpop.permute.xlu1 (!%p777_p10), %563  ;;  %v554_v63 = vpop.permute.xlu0 (!%p777_p10), %553 }
 0x10e   : > { %v569_v4 = vpop.permute.xlu1 (!%p777_p10), %568  ;;  %v559_v5 = vpop.permute.xlu0 (!%p777_p10), %558 }
 0x112   : > { %v579_v10 = vpop.permute.xlu1 (!%p777_p10), %578  ;;  %v574_v11 = vpop.permute.xlu0 (!%p777_p10), %573 }
 0x173   : > { %v805_v23 = vpop.f32.mrb[0].mxu1  ;;  %v799_v24 = vpop.f32.mrb[0].mxu0 }
 0x174   : > { %v806_v26 = vpop.f32.mrb[1].mxu1  ;;  %v800_v28 = vpop.f32.mrb[1].mxu0 }
 0x175   : > { %v807_v29 = vadd.f32 %v806_v26, %v805_v23  ;;  %v808_v30 = vpop.f32.mrb[2].mxu1  ;;  %v801_v31 = vadd.f32 %v800_v28, %v799_v24  ;;  %v802_v32 = vpop.f32.mrb[2].mxu0 }
 0x176   : > { %v809_v34 = vpop.f32.mrb[3].mxu1  ;;  %v803_v36 = vpop.f32.mrb[3].mxu0 }
 0x177   : > { %v525_v37 = vadd.f32 %v807_v29, %v298_v25  ;;  %v810_v38 = vadd.f32 %v809_v34, %v808_v30  ;;  %v523_v39 = vadd.f32 %v801_v31, %v296_v27  ;;  %v804_v40 = vadd.f32 %v803_v36, %v802_v32 }
 0x179   : > { %531 = vst [vmem:[#allocation2 + $0x10] sm:$0xff] %v525_v37  ;;  %v526_v41 = vadd.f32 %v810_v38, %v299_v33  ;;  %529 = vst [vmem:[#allocation2] sm:$0xff] %v523_v39  ;;  %v524_v42 = vadd.f32 %v804_v40, %v297_v35 }
 0x17b   : > { %532 = vst [vmem:[#allocation2 + $0x18] sm:$0xff] %v526_v41  ;;  %530 = vst [vmem:[#allocation2 + $0x8] sm:$0xff] %v524_v42  ;;  %v811_v43 = vpop.f32.mrb[4].mxu1 }
 0x17c   : > { %v812_v45 = vpop.f32.mrb[5].mxu1 }
 0x17d   : > { %v813_v46 = vadd.f32 %v812_v45, %v811_v43  ;;  %v814_v47 = vpop.f32.mrb[6].mxu1  ;;  %538 = sbr.rel (%p777_p10) target bundleno = 398 (0x18e), region = 48 }
 0x17e   : > { %v815_v49 = vpop.f32.mrb[7].mxu1 }
 0x17f   : > { %v527_v50 = vadd.f32 %v813_v46, %v300_v44  ;;  %v816_v51 = vadd.f32 %v815_v49, %v814_v47 }
 0x180   : > { %v541_v60 = vld [vmem:[#allocation2 + $0x10] sm:$0xff] (!%p777_p10)  ;;  %v539_v61 = vld [vmem:[#allocation2] sm:$0xff] (!%p777_p10) }
 0x181   : > { %533 = vst [vmem:[#allocation2 + $0x20] sm:$0xff] %v527_v50  ;;  %v528_v52 = vadd.f32 %v816_v51, %v301_v48  ;;  %v583_v0 = vadd.f32 (!%p777_p10), %v564_v62, %v541_v60  ;;  %v581_v1 = vadd.f32 (!%p777_p10), %v554_v63, %v539_v61 }
 0x182   : > { %v542_v2 = vld [vmem:[#allocation2 + $0x18] sm:$0xff] (!%p777_p10)  ;;  %v540_v3 = vld [vmem:[#allocation2 + $0x8] sm:$0xff] (!%p777_p10) }
 0x183   : > { %534 = vst [vmem:[#allocation2 + $0x28] sm:$0xff] %v528_v52  ;;  %589 = vst [vmem:[%s1521_s10 + $0x10] sm:$0xff] (!%p777_p10), %v583_v0  ;;  %v584_v6 = vadd.f32 (!%p777_p10), %v569_v4, %v542_v2  ;;  %v582_v7 = vadd.f32 (!%p777_p10), %v559_v5, %v540_v3 }
 0x184   : > { %587 = vst [vmem:[%s1521_s10] sm:$0xff] %v581_v1 }
 0x185   : > { %590 = vst [vmem:[%s1521_s10 + $0x18] sm:$0xff] %v584_v6  ;;  %588 = vst [vmem:[%s1521_s10 + $0x8] sm:$0xff] %v582_v7 }
 0x188   : > { %v543_v9 = vld [vmem:[#allocation2 + $0x20] sm:$0xff] }
 0x189   : > { %v585_v13 = vadd.f32 %v574_v11, %v543_v9 }
 0x18a   : > { %v544_v8 = vld [vmem:[#allocation2 + $0x28] sm:$0xff] }
 0x18b   : > { %v586_v12 = vadd.f32 %v579_v10, %v544_v8  ;;  %591 = vst [vmem:[%s1521_s10 + $0x20] sm:$0xff] %v585_v13 }
 0x18d   : > { %592 = vst [vmem:[%s1521_s10 + $0x28] sm:$0xff] %v586_v12 }
 0x18e PF: > { %s1700_s22 = sld [smem:[#allocation13_spill]]  ;;  %s1701_s28 = sld [smem:[#allocation18_spill]] }
 0x18f   : > { %s609_s3 = sshll.u32 %s1521_s10, 4  ;;  %s1582_s0 = scalar_lea.sflag [#allocation5], %s272_s18  ;;  %s1578_s3 = int_to_ptr.vmem [resolvable:$true] %s609_s3 }
 0x190   : > { %s1064_s21 = scalar_lea.vmem %s1578_s3, 768  ;;  %p1702_p0 = scmp.ne.s32.totalorder %s1692_s4, 0 }
 0x191   : > { %p1065_p1 = scmp.ne.s32.totalorder %s1578_s3, %s1064_s21  ;;  %s1225_s9 = smov [#allocation8]  }
 0x192   : > { %s1068_s27 = sshll.u32 %s1225_s9, 4  ;;  %s1069_s27 = int_to_ptr.vmem [resolvable:$false] %s1068_s27 }
 0x193   : > { %p1066_p4 = pnand %p1065_p1, %p1702_p0  ;;  %s1070_s15 = scalar_lea.vmem %s1069_s27, 1536 }
 0x194   : > { %s778_s6 = sshll.u32 %s1700_s22, 7  ;;  %p1071_p12 = scmp.lt.s32.totalorder %s1578_s3, %s1069_s27 }
 0x195   : > { %s1575_s5 = scalar_lea.hbm %s1701_s28, %s778_s6  ;;  %p1067_p5 = pneg %p1066_p4 }
 0x196   : > { %p1072_p11 = scmp.lt.s32.totalorder %s1070_s15, %s1064_s21 }
 0x198   : > { %p1073_p3 = por %p1072_p11, %p1071_p12 }
 0x19a   : > { %p1074_p6 = pnand %p1073_p3, %p1067_p5 }
 0x19c   : > { %1077 = shalt.err (!%p1074_p6)
}
 0x19d   : > { %s1078_s18 = scalar_lea.hbm %s1575_s5, 768  ;;  %s1082_s22 = scalar_lea.hbm %s1701_s28, 1536 }
 0x19e   : > { %p1079_p9 = scmp.ne.s32.totalorder %s1575_s5, %s1078_s18  ;;  %p1083_p7 = scmp.lt.u32.totalorder %s1575_s5, %s1701_s28 }
 0x19f   : > { %p1084_p8 = scmp.lt.u32.totalorder %s1082_s22, %s1078_s18  ;;  %p1086_p1 = scmp.lt.u32.totalorder %s1078_s18, %s1575_s5 }
 0x1a0   : > { %p1080_p2 = pnand %p1079_p9, %p1702_p0 }
 0x1a1   : > { %p1085_p10 = por %p1084_p8, %p1083_p7 }
 0x1a2   : > { %p1081_p13 = pneg %p1080_p2 }
 0x1a3   : > { %p1087_p4 = por %p1086_p1, %p1085_p10 }
 0x1a5   : > { %p1088_p5 = pnand %p1087_p4, %p1081_p13 }
 0x1a7   : > { %1091 = shalt.err (!%p1088_p5)
}
 0x1a8   : > { %s1226_s26 = smov 128   ;;  %s1227_s21 = smov 256  }
 0x1a9   : > { %s1228_s9 = smov 8  }
 0x1aa   : > { %840 = dma.vmem_to_hbm [thread:$0]  (%p1702_p0), %s1578_s3, 768, %s1575_s5, %s1582_s0, %s1226_s26, %s1227_s21, %s1228_s9  }
 0x1ab PF: > { %p854_p12 = scmp.ge.s32.totalorder %s1214_s25, 2  ;;  %s624_s27 = sand.u32 1, %s1162_s12  }
 0x1ac   : > { %p1703_p11 = scmp.ne.s32.totalorder %s1693_s2, 0  ;;  %s625_s15 = scalar_lea.sflag [#allocation5], %s624_s27 }
 0x1ae   : > { %p850_p3 = pnand %p854_p12, %p1703_p11 }
 0x1b0   : > { %1157 = dma.done.wait (!%p850_p3), %s625_s15, 768  }
 0x1b1   : > { %1159 = vsyncadd (!%p850_p3), %s625_s15, 4294966528  ;;  %s22_s25 = sadd.s32 1, %s1214_s25   ;;  %s1705_s4 = sld [smem:[#allocation12_spill]] }
 0x1b2   : > { %p1611_p6 = scmp.ge.s32.totalorder %s22_s25, 8   ;;  %s1706_s20 = sld [smem:[#allocation15_spill]] }
 0x1b3   : > { %s1707_s2 = sld [smem:[#allocation14_spill]]  ;;  %s1709_s12 = smov %s1166_s13 }
 0x1b4   : > { %s1710_s13 = smov %s1170_s14  ;;  %s1711_s14 = smov %s1446_s11 }
 0x1b5   : > { %s1712_s15 = smov %s1178_s16  ;;  %s1713_s16 = smov %s1182_s17 }
 0x1b6   : > { %s1714_s17 = smov %s1449_s29  ;;  %s1715_s18 = smov %s1190_s19 }
 0x1b7   : > { %s1716_s19 = smov %s1705_s4  ;;  %s1717_s21 = smov %s1206_s23 }
 0x1b8   : > { %s1718_s22 = smov %s1210_s24  ;;  %s1720_s24 = smov %s1726_s8 }
 0x1b9   : > { %s1719_s23 = smov %s1707_s2  ;;  %21 = sbr.rel (!%p1611_p6) target bundleno = 16 (0x10), region = 101 }
 0x1c0   :  { %630 = vsyncpa [#allocation4], 1 }
 0x1c1   :  { %632 = vsyncpa [#allocation4 + $0x1], 1 }
 0x1c2   :  { %633 = vsyncpa [#allocation7], 1 }
 0x1c3   :  { %635 = vsyncpa [#allocation7 + $0x1], 1 }
 0x1c4   :  { %636 = vsyncpa [#allocation5], 1 }
 0x1c5   :  { %638 = vsyncpa [#allocation5 + $0x1], 1 }

</bundles_post_ra>
